<compile_context>
chip_gen: v6e
topology: v6e:2x2x1
jax: 0.10.0
libtpu: 0.0.40
codegen_flags: <defaults>
</compile_context>

<pallas_src>
import math
import functools

import jax
import jax.numpy as jnp
from jax import lax
from jax.experimental import pallas as pl
from jax.experimental.pallas import tpu as pltpu


def _round_up(x, m):
    return ((x + m - 1) // m) * m


def _pick_tile(n, base, cap):
    """Pick a tile size (multiple of `base`, <= cap) minimizing padding waste,
    preferring larger tiles when the extra padding is small (<~6%)."""
    cap = max(base, (int(cap) // base) * base)
    n_aligned = _round_up(int(n), base)
    if n_aligned <= cap:
        return n_aligned, n_aligned                      # single tile, no waste
    pads = {base * k: _round_up(n, base * k) for k in range(1, cap // base + 1)}
    min_pad = min(pads.values())
    slack = max(min_pad // 16, base)
    for t in sorted(pads, reverse=True):
        if pads[t] <= min_pad + slack:
            return t, pads[t]
    return base, pads[base]


def _cosface_kernel(x_ref, inv_x_ref, inv_w_ref, w_ref, o_ref, *, scale):
    # Raw x @ w.T on the MXU: contraction directly on the shared feature axis
    # (no transpose / XLU relayout), f32 accumulation. Operands are already in
    # the MXU dtype (cast in the wrapper), so no per-tile VPU cast here.
    wx = lax.dot_general(
        x_ref[...], w_ref[...],
        dimension_numbers=(((1,), (1,)), ((), ())),
        preferred_element_type=jnp.float32)              # (TM, TN) f32

    # Epilogue (all f32, O(TM*TN)): output-side normalization.
    #   inv_x_ref : (TM, 1)  = 1/||x_b||            (0 for padded rows)
    #   inv_w_ref : (1, TN)  = scale/||w_c||        (0 for padded classes)
    wx = wx * inv_x_ref[...] * inv_w_ref[...]
    o_ref[...] = jnp.clip(wx, -scale, scale).astype(o_ref.dtype)


def prepare_cosface_weight(weight, scale=16.0, *, tn=512,
                           mxu_dtype=jnp.bfloat16):
    """One-time (per weight value) preparation. Hoist this out of the hot loop:
    returns (padded+cast weight, scaled inverse class norms, out_features, TN).
    """
    C, D = weight.shape
    TN, C_pad = _pick_tile(C, 128, tn)

    w32 = weight.astype(jnp.float32)
    inv_w = lax.rsqrt(jnp.sum(w32 * w32, axis=1)) * jnp.float32(scale)   # (C,)
    if C_pad != C:
        inv_w = jnp.pad(inv_w, (0, C_pad - C))            # padded classes -> 0
        weight = jnp.pad(weight, ((0, C_pad - C), (0, 0)))
    inv_w = inv_w.reshape(1, C_pad)
    w_p = weight.astype(mxu_dtype)
    return w_p, inv_w, C, TN


def cosface_apply(x, w_prepared, inv_norm_w, out_features, tn, scale=16.0, *,
                  tm=512, out_dtype=None, weight_buffers=2):
    """Hot path: x is (B, in_features); weight args come from
    prepare_cosface_weight(). Returns (B, out_features) logits."""
    B, D = x.shape
    C_pad, Dw = w_prepared.shape
    TN = int(tn)
    assert D == Dw and C_pad % TN == 0 and inv_norm_w.shape == (1, C_pad)

    TM, B_pad = _pick_tile(B, 8, tm)
    out_dtype = jnp.dtype(out_dtype if out_dtype is not None else x.dtype)

    # Inverse input row norms in f32 from the original-precision activations
    # (computed once per call, not per class tile).
    x32 = x.astype(jnp.float32)
    inv_x = lax.rsqrt(jnp.sum(x32 * x32, axis=1, keepdims=True))  # (B, 1) f32
    if B_pad != B:
        inv_x = jnp.pad(inv_x, ((0, B_pad - B), (0, 0)))   # padded rows -> 0
        x = jnp.pad(x, ((0, B_pad - B), (0, 0)))
    x_p = x.astype(w_prepared.dtype)

    n_bt, n_ct = B_pad // TM, C_pad // TN

    # Weight BlockSpec; optionally deeper-buffered (e.g. 3 on v5e if the
    # weight DMA is still exposed relative to the MXU).
    if int(weight_buffers) != 2:
        w_spec = pl.BlockSpec((TN, D), lambda i, j: (j, 0),
                              pipeline_mode=pl.Buffered(int(weight_buffers)))
    else:
        w_spec = pl.BlockSpec((TN, D), lambda i, j: (j, 0))

    # VMEM budget: double-buffered tiles + f32 matmul intermediate + headroom,
    # clamped to what this TPU generation actually has (v7x: 64 MiB per TC).
    itemsize = jnp.dtype(w_prepared.dtype).itemsize
    tile_bytes = (TM * D * itemsize + TN * D * itemsize
                  + 4 * (TM + TN)
                  + TM * TN * out_dtype.itemsize)
    need = 2 * tile_bytes + TM * TN * 4 + (8 << 20)
    try:
        vmem_cap = int(pltpu.get_tpu_info().vmem_capacity_bytes)
    except Exception:
        vmem_cap = 64 << 20
    usable = (vmem_cap * 3) // 4
    vmem_limit = int(min(usable, max(need, 32 << 20)))

    # Megacore: split the CLASS axis across TensorCores so each core streams a
    # disjoint slice of the weight (splitting batch would make both cores
    # re-stream the full weight). Batch is only parallel when it's the sole
    # multi-tile axis.
    batch_sem = "parallel" if (n_ct == 1 and n_bt > 1) else "arbitrary"

    kernel = functools.partial(_cosface_kernel, scale=float(scale))
    out = pl.pallas_call(
        kernel,
        out_shape=jax.ShapeDtypeStruct((B_pad, C_pad), out_dtype),
        grid=(n_bt, n_ct),
        in_specs=[
            pl.BlockSpec((TM, D), lambda i, j: (i, 0)),   # activations tile
            pl.BlockSpec((TM, 1), lambda i, j: (i, 0)),   # 1/||x|| column (f32)
            pl.BlockSpec((1, TN), lambda i, j: (0, j)),   # scale/||w|| row (f32)
            w_spec,                                        # weight tile
        ],
        out_specs=pl.BlockSpec((TM, TN), lambda i, j: (i, j)),
        compiler_params=pltpu.CompilerParams(
            dimension_semantics=(batch_sem, "parallel"),
            vmem_limit_bytes=vmem_limit),
    )(x_p, inv_x, inv_norm_w, w_prepared)

    return out[:B, :out_features]


def cosface_forward(x, weight, scale=16.0, *, tm=512, tn=512,
                    mxu_dtype=jnp.bfloat16, out_dtype=None, weight_buffers=2):
    """Convenience wrapper: x (B, in_features), weight (out_features, in_features).
    For repeated calls with the same weight, call prepare_cosface_weight() once
    and cosface_apply() per step instead."""
    w_p, inv_w, C, TN = prepare_cosface_weight(
        weight, scale, tn=tn, mxu_dtype=mxu_dtype)
    return cosface_apply(x, w_p, inv_w, C, TN, scale, tm=tm,
                         out_dtype=out_dtype, weight_buffers=weight_buffers)


def reference_forward(x, weight, scale=16.0):
    norm_w = jnp.linalg.norm(weight, axis=1, keepdims=True)
    unit_w = weight / norm_w
    norm_x = jnp.linalg.norm(x, axis=1, keepdims=True)
    unit_x = x / norm_x
    wx = jnp.clip(unit_x @ unit_w.T, -1.0, 1.0)
    return wx * scale


if __name__ == "__main__":
    # Small, non-aligned shapes so the wrapper's padding and the 2-D grid
    # (multiple batch tiles x multiple class tiles) are actually exercised.
    in_features = 64
    out_features = 300
    batch = 16
    scale = 16.0

    key = jax.random.PRNGKey(0)
    kx, kw = jax.random.split(key)

    # Deterministic init matching reset_parameters(): uniform(-stdv, stdv).
    stdv = 1.0 / math.sqrt(in_features)
    weight = jax.random.uniform(
        kw, (out_features, in_features), dtype=jnp.float32,
        minval=-stdv, maxval=stdv)
    x = jax.random.normal(kx, (batch, in_features), dtype=jnp.float32)

    ref = reference_forward(x, weight, scale=scale)

    # f32-operand MXU path on a multi-tile grid (2 batch x 3 class tiles):
    # tight tolerance vs the f32 reference.
    out_f32 = cosface_forward(x, weight, scale=scale, tm=8, tn=128,
                              mxu_dtype=jnp.float32)
    out_f32 = jax.block_until_ready(out_f32)
    assert out_f32.shape == (batch, out_features)
    assert bool(jnp.all(jnp.isfinite(out_f32))), "non-finite values in output"
    assert jnp.allclose(out_f32, ref, atol=1e-4, rtol=1e-4), \
        "f32 path mismatch vs reference"

    # Default production config (bf16 operands, single-tile grid here).
    out_bf16 = cosface_forward(x, weight, scale=scale)
    out_bf16 = jax.block_until_ready(out_bf16)
    assert out_bf16.shape == (batch, out_features)
    assert jnp.allclose(out_bf16, ref, atol=2e-1, rtol=5e-2), \
        "bf16-operand path mismatch vs reference"

    # bf16-logit output path (halves the B*C output HBM writes).
    out_lo = cosface_forward(x, weight, scale=scale, out_dtype=jnp.bfloat16)
    out_lo = jax.block_until_ready(out_lo)
    assert out_lo.dtype == jnp.bfloat16 and out_lo.shape == (batch, out_features)
    assert jnp.allclose(out_lo.astype(jnp.float32), ref, atol=3e-1, rtol=1e-1), \
        "bf16-logit path mismatch vs reference"

    print("KERNEL_OK")
</pallas_src>

<mosaic_0001>
module attributes {stable_mosaic.version = 11 : i64} {
  func.func @_cosface_kernel(%arg0: i32, %arg1: i32, %arg2: memref<8x64xf32, #tpu.memory_space<vmem>>, %arg3: memref<8x1xf32, #tpu.memory_space<vmem>>, %arg4: memref<1x128xf32, #tpu.memory_space<vmem>>, %arg5: memref<128x64xf32, #tpu.memory_space<vmem>>, %arg6: memref<8x128xf32, #tpu.memory_space<vmem>>) attributes {dimension_semantics = [#tpu.dimension_semantics<arbitrary>, #tpu.dimension_semantics<parallel>], iteration_bounds = array<i64: 2, 3>, scalar_prefetch = 0 : i64, scratch_operands = 0 : i64, tpu.core_type = #tpu.core_type<tc>, window_params = [{transform_indices = @transform_0, window_bounds = array<i64: 8, 64>}, {transform_indices = @transform_1, window_bounds = array<i64: 8, 1>}, {transform_indices = @transform_2, window_bounds = array<i64: 1, 128>}, {transform_indices = @transform_3, window_bounds = array<i64: 128, 64>}, {transform_indices = @transform_4, window_bounds = array<i64: 8, 128>}]} {
    %c0 = arith.constant 0 : index
    %c0_0 = arith.constant 0 : index
    %0 = vector.load %arg2[%c0, %c0_0] : memref<8x64xf32, #tpu.memory_space<vmem>>, vector<8x64xf32>
    %c0_1 = arith.constant 0 : index
    %c0_2 = arith.constant 0 : index
    %1 = vector.load %arg5[%c0_1, %c0_2] : memref<128x64xf32, #tpu.memory_space<vmem>>, vector<128x64xf32>
    %cst = arith.constant dense<0.000000e+00> : vector<8x128xf32>
    %2 = tpu.matmul %0, %1, %cst {dimension_numbers = #tpu.dot_dimension_numbers<[1], [1], [0], [0], [0, 0, 1, 0], [], []>} : vector<8x64xf32>, vector<128x64xf32>, vector<8x128xf32> -> vector<8x128xf32>
    %c0_3 = arith.constant 0 : index
    %c0_4 = arith.constant 0 : index
    %3 = vector.load %arg3[%c0_3, %c0_4] : memref<8x1xf32, #tpu.memory_space<vmem>>, vector<8x1xf32>
    %4 = vector.broadcast %3 : vector<8x1xf32> to vector<8x128xf32>
    %5 = arith.mulf %2, %4 : vector<8x128xf32>
    %c0_5 = arith.constant 0 : index
    %c0_6 = arith.constant 0 : index
    %6 = vector.load %arg4[%c0_5, %c0_6] : memref<1x128xf32, #tpu.memory_space<vmem>>, vector<1x128xf32>
    %7 = vector.broadcast %6 : vector<1x128xf32> to vector<8x128xf32>
    %8 = arith.mulf %5, %7 : vector<8x128xf32>
    %cst_7 = arith.constant -1.600000e+01 : f32
    %cst_8 = arith.constant 1.600000e+01 : f32
    %9 = vector.broadcast %cst_7 : f32 to vector<8x128xf32>
    %10 = arith.maximumf %9, %8 : vector<8x128xf32>
    %11 = vector.broadcast %cst_8 : f32 to vector<8x128xf32>
    %12 = arith.minimumf %11, %10 : vector<8x128xf32>
    %c0_9 = arith.constant 0 : index
    %c0_10 = arith.constant 0 : index
    %13 = vector.load %arg6[%c0_9, %c0_10] : memref<8x128xf32, #tpu.memory_space<vmem>>, vector<8x128xf32>
    tpu.vector_store %arg6[%c0_9, %c0_10], %12 {strides = array<i32>} : memref<8x128xf32, #tpu.memory_space<vmem>>, vector<8x128xf32>,
    return
  }
  func.func @transform_0(%arg0: i32, %arg1: i32) -> (i32, i32) {
    %c0_i32 = arith.constant 0 : i32
    %c0_i32_0 = arith.constant 0 : i32
    return %arg0, %c0_i32 : i32, i32
  }
  func.func @transform_1(%arg0: i32, %arg1: i32) -> (i32, i32) {
    %c0_i32 = arith.constant 0 : i32
    %c0_i32_0 = arith.constant 0 : i32
    return %arg0, %c0_i32 : i32, i32
  }
  func.func @transform_2(%arg0: i32, %arg1: i32) -> (i32, i32) {
    %c0_i32 = arith.constant 0 : i32
    %c0_i32_0 = arith.constant 0 : i32
    return %c0_i32, %arg1 : i32, i32
  }
  func.func @transform_3(%arg0: i32, %arg1: i32) -> (i32, i32) {
    %c0_i32 = arith.constant 0 : i32
    %c0_i32_0 = arith.constant 0 : i32
    return %arg1, %c0_i32 : i32, i32
  }
  func.func @transform_4(%arg0: i32, %arg1: i32) -> (i32, i32) {
    %c0_i32 = arith.constant 0 : i32
    return %arg0, %arg1 : i32, i32
  }
}

</mosaic_0001>

<bundles_post_ra>
// kernel: tpu_custom_call.1
= control target key start
LH: loop header
LB: loop body
LE: loop exit
PB: predicated region body
PF: predicated region fallthrough
CT: control target
= control target key end

     0   :  { %9 = vsyncpa [#allocation3], 0  ;;  %s998_s0 = inlined_call_operand.vmem [shape: f32[16,64], index: 0, kind: input, shape index: {}]   ;;  %s999_s1 = inlined_call_operand.vmem [shape: f32[16,1], index: 1, kind: input, shape index: {}]   ;;  %s1000_s2 = inlined_call_operand.vmem [shape: f32[1,384], index: 2, kind: input, shape index: {}]   ;;  %s1001_s3 = inlined_call_operand.vmem [shape: f32[384,64], index: 3, kind: input, shape index: {}]   ;;  %s1002_s4 = inlined_call_operand.hbm [shape: f32[16,384], index: 4, kind: output, shape index: {}]  }
   0x1   :  { %11 = vsyncpa [#allocation3 + $0x1], 0  ;;  %s822_s15 = smov 0   ;;  %s824_s16 = smov 0  }
   0x2   :  { %s826_s17 = smov 0   ;;  %s828_s18 = smov 0  }
   0x3   :  { %s830_s19 = smov 0   ;;  %s832_s20 = smov 0  }
   0x4   :  { %s834_s21 = smov 0   ;;  %s836_s22 = smov 0  }
   0x5 LB: > { %s538_s23 = sadd.s32 4294967295, %s791_s22   ;;  %s539_s24 = sadd.s32 4294967294, %s791_s22   ;;  %s791_s22 = sphi %s836_s22, %s17_s22   ;;  %s787_s21 = sphi %s834_s21, %s1011_s21   ;;  %s783_s20 = sphi %s832_s20, %s1010_s20   ;;  %s779_s19 = sphi %s830_s19, %s1009_s19   ;;  %s775_s18 = sphi %s828_s18, %s1008_s18   ;;  %s771_s17 = sphi %s826_s17, %s1007_s17   ;;  %s767_s16 = sphi %s824_s16, %s1006_s16   ;;  %s763_s15 = sphi %s822_s15, %s1005_s15  }
   0x6   : > { %s26_s25 = sadd.s32 1, %s783_s20  ;;  %s29_s26 = sadd.s32 1, %s787_s21 }
   0x7   : > { %p27_p0 = scmp.ge.s32.totalorder %s26_s25, 3  ;;  %p152_p1 = scmp.ne.s32.totalorder %s771_s17, %s767_s16 }
   0x8   : > { %p153_p2 = scmp.eq.s32.totalorder %s538_s23, 5  ;;  %p158_p5 = scmp.ne.s32.totalorder %s767_s16, %s763_s15 }
   0x9   : > { %s1013_s25 = smov (%p27_p0, %s26_s25), 0  ;;  %s1015_s26 = smov (!%p27_p0, %s29_s26), %s787_s21 }
   0xa   : > { %s138_s27 = ssub.s32 %s783_s20, %s1013_s25  ;;  %p873_p3 = por %p153_p2, %p152_p1 }
   0xb   : > { %p31_p4 = scmp.ge.s32.totalorder %s1015_s26, 2  ;;  %p159_p6 = scmp.eq.s32.totalorder %s539_s24, 5 }
   0xc   : > { %p542_p7 = scmp.ge.s32.totalorder %s791_s22, 1  ;;  %p206_p9 = scmp.lt.s32.totalorder %s791_s22, 7 }
   0xd   : > { %s1017_s26 = smov (%p31_p4, %s1015_s26), 0  ;;  %p882_p8 = por %p159_p6, %p158_p5 }
   0xe   : > { %s137_s30 = ssub.s32 %s787_s21, %s1017_s26  ;;  %s142_s5 = sadd.s32 1, %s771_s17 }
   0xf   : > { %s139_s6 = sor.u32 %s138_s27, %s137_s30  ;;  %p207_p10 = pnand %p542_p7, %p206_p9 }
  0x10   : > { %p140_p11 = scmp.eq.s32.totalorder %s139_s6, 0  ;;  %s546_s8 = sshll.u32 (!%p207_p10), %s775_s18, 4 }
  0x11   : > { %210 = sbr.rel (%p207_p10) target bundleno = 302 (0x12e), region = 36  ;;  %p243_p12 = scmp.lt.s32.totalorder (!%p207_p10), %s779_s19, 1 }
  0x12   : > { %s891_s7 = scalar_select %p140_p11, %s771_s17, %s142_s5  }
  0x13   : > { %p255_p13 = scmp.lt.s32.totalorder (!%p207_p10), %s546_s8, 47  ;;  %p251_p0 = scmp.lt.s32.totalorder (!%p207_p10), %s775_s18, 2 }
  0x14   : > { %s623_s11 = smul.u32 (!%p207_p10), 3, %s779_s19 }
  0x16   : > { %v793_v0 = vmov 0.0   ;;  %vm794_vm0 = vmmov 0   ;;  %v795_v1 = vmov 0   ;;  %s1019_s8 = smov (!%p255_p13, %s546_s8), 47  ;;  %vm277_vm1 = vcmask 523264  }
  0x17   : > { %588 = vmatprep.subr.mxu0 %v793_v0  ;;  %620 = vmatprep.mubr.msk.f32.mxu0 %vm794_vm0, %v793_v0  ;;  %s896_s9 = scalar_select %p243_p12, %s779_s19, 1 }
  0x18   : > { %698 = vset.pattern.permute.xlu0 %v795_v1  ;;  %s547_s10 = sshll.u32 %s1019_s8, 3 }
  0x19   : > { %s901_s13 = scalar_lea.vmem %s1001_s3, %s547_s10  ;;  %s544_s14 = sshll.u32 %s896_s9, 3 }
  0x1a   : > { %v276_v2 = vld [vmem:[%s901_s13 + $0x78] sm:$0xff]  ;;  %v275_v3 = vld [vmem:[%s901_s13 + $0x70] sm:$0xff]  ;;  %s250_s27 = scalar_lea.vmem %s999_s1, %s544_s14  ;;  %v274_v5 = vld [vmem:[%s901_s13 + $0x68] sm:$0xff]  ;;  %s246_s6 = scalar_lea.vmem %s998_s0, %s544_s14 }
  0x1b   : > { %589 = vmatpush3.xpose.msk.msra.mxu0 %vm277_vm1, %v276_v2  ;;  %v399_v4 = vld [vmem:[%s250_s27] sm:$0xff]  ;;  %v272_v7 = vld [vmem:[%s901_s13 + $0x58] sm:$0xff]  ;;  %v271_v8 = vld [vmem:[%s901_s13 + $0x50] sm:$0xff]  ;;  %s252_s8 = scalar_select %p251_p0, %s775_s18, 2 }
  0x1c   : > { %590 = vmatprep.subr.mxu0 %v793_v0  ;;  %402 = vperm.xlu0 %698, %v399_v4   ;;  %v273_v6 = vld [vmem:[%s901_s13 + $0x60] sm:$0xff]  ;;  %v270_v9 = vld [vmem:[%s901_s13 + $0x48] sm:$0xff]  ;;  %v268_v11 = vld [vmem:[%s901_s13 + $0x38] sm:$0xff]  ;;  %s240_s10 = sand.u32 1, %s767_s16   ;;  %s429_s9 = sadd.s32 %s775_s18, %s623_s11 }
  0x1d   : > { %v269_v10 = vld [vmem:[%s901_s13 + $0x40] sm:$0xff]  ;;  %v267_v12 = vld [vmem:[%s901_s13 + $0x30] sm:$0xff]  ;;  %v266_v13 = vld [vmem:[%s901_s13 + $0x28] sm:$0xff]  ;;  %s543_s12 = sshll.u32 %s240_s10, 3  ;;  %s253_s27 = scalar_lea.vmem %s1000_s2, %s252_s8 }
  0x1e   : > { %v265_v14 = vld [vmem:[%s901_s13 + $0x20] sm:$0xff]  ;;  %v264_v15 = vld [vmem:[%s901_s13 + $0x18] sm:$0xff]  ;;  %v263_v16 = vld [vmem:[%s901_s13 + $0x10] sm:$0xff]  ;;  %s242_s14 = scalar_lea.vmem [#allocation2], %s543_s12  ;;  %s418_s23 = scalar_lea.sflag [#allocation3], %s240_s10 }
  0x1f   : > { %591 = vmatpush3.xpose.msk.msra.mxu0 %vm277_vm1, %v275_v3  ;;  %v262_v17 = vld [vmem:[%s901_s13 + $0x8] sm:$0xff]  ;;  %v261_v18 = vld [vmem:[%s901_s13] sm:$0xff]  ;;  %s568_s13 = sshll.u32 %s429_s9, 7  ;;  %s433_s30 = sshll.u32 %s242_s14, 4  ;;  %s434_s30 = int_to_ptr.vmem [resolvable:$true] %s433_s30 }
  0x20   : > { %592 = vmatprep.subr.mxu0 %v793_v0  ;;  %v260_v19 = vld [vmem:[%s246_s6] sm:$0xff]  ;;  %s431_s19 = scalar_lea.hbm %s1002_s4, %s568_s13  ;;  %s699_s8 = scalar_lea.vmem %s434_s30, 128 }
  0x21   : > { %v565_v22 = vld [vmem:[%s253_s27] ss:$0 sm:$0xff]  ;;  %p700_p1 = scmp.ne.s32.totalorder %s434_s30, %s699_s8  ;;  %s796_s18 = smov [#allocation2]  }
  0x22   : > { %s703_s11 = sshll.u32 %s796_s18, 4  ;;  %s704_s11 = int_to_ptr.vmem [resolvable:$false] %s703_s11 }
  0x23   : > { %593 = vmatpush3.xpose.msk.msra.mxu0 %vm277_vm1, %v274_v5  ;;  %p701_p2 = pnand %p700_p1, %p873_p3  ;;  %s705_s24 = scalar_lea.vmem %s704_s11, 256 }
  0x24   : > { %594 = vmatprep.subr.mxu0 %v793_v0  ;;  %p706_p5 = scmp.lt.s32.totalorder %s434_s30, %s704_s11  ;;  %p707_p6 = scmp.lt.s32.totalorder %s705_s24, %s699_s8 }
  0x25   : > { %p702_p4 = pneg %p701_p2 }
  0x26   : > { %p708_p7 = por %p707_p6, %p706_p5 }
  0x27   : > { %595 = vmatpush3.xpose.msk.msra.mxu0 %vm277_vm1, %v273_v6 }
  0x28   : > { %596 = vmatprep.subr.mxu0 %v793_v0  ;;  %p709_p9 = pnand %p708_p7, %p702_p4 }
  0x2b   : > { %597 = vmatpush3.xpose.msk.msra.mxu0 %vm277_vm1, %v272_v7 }
  0x2c   : > { %598 = vmatprep.subr.mxu0 %v793_v0 }
  0x2f   : > { %599 = vmatpush3.xpose.msk.msra.mxu0 %vm277_vm1, %v271_v8 }
  0x30   : > { %600 = vmatprep.subr.mxu0 %v793_v0 }
  0x33   : > { %601 = vmatpush3.xpose.msk.msra.mxu0 %vm277_vm1, %v270_v9 }
  0x34   : > { %602 = vmatprep.subr.mxu0 %v793_v0 }
  0x37   : > { %603 = vmatpush3.xpose.msk.msra.mxu0 %vm277_vm1, %v269_v10 }
  0x38   : > { %604 = vmatprep.subr.mxu0 %v793_v0 }
  0x3b   : > { %605 = vmatpush3.xpose.msk.msra.mxu0 %vm277_vm1, %v268_v11 }
  0x3c   : > { %606 = vmatprep.subr.mxu0 %v793_v0 }
  0x3f   : > { %607 = vmatpush3.xpose.msk.msra.mxu0 %vm277_vm1, %v267_v12 }
  0x40   : > { %608 = vmatprep.subr.mxu0 %v793_v0 }
  0x43   : > { %609 = vmatpush3.xpose.msk.msra.mxu0 %vm277_vm1, %v266_v13 }
  0x44   : > { %610 = vmatprep.subr.mxu0 %v793_v0 }
  0x47   : > { %611 = vmatpush3.xpose.msk.msra.mxu0 %vm277_vm1, %v265_v14 }
  0x48   : > { %612 = vmatprep.subr.mxu0 %v793_v0 }
  0x4b   : > { %613 = vmatpush3.xpose.msk.msra.mxu0 %vm277_vm1, %v264_v15 }
  0x4c   : > { %614 = vmatprep.subr.mxu0 %v793_v0 }
  0x4f   : > { %615 = vmatpush3.xpose.msk.msra.mxu0 %vm277_vm1, %v263_v16 }
  0x50   : > { %616 = vmatprep.subr.mxu0 %v793_v0 }
  0x53   : > { %617 = vmatpush3.xpose.msk.msra.mxu0 %vm277_vm1, %v262_v17 }
  0x54   : > { %618 = vmatprep.subr.mxu0 %v793_v0 }
  0x57   : > { %619 = vmatpush3.xpose.msk.msra.mxu0 %vm277_vm1, %v261_v18 }
  0x5a   : > { %621 = vmatmul.mubr.msk.f32.vlgmr.msra.gmra.mxu0 %vm277_vm1, %v260_v19 }
  0x97   : > { %v403_v20 = vpop.permute.xlu0 %402 }
 0x11a   : > { %v395_v21 = vpop.f32.mrf.mxu0 }
 0x11b   : > { %v405_v23 = vmul.f32 %v403_v20, %v395_v21 }
 0x11c   : > { %v622_v24 = vpop.f32.mrf.mxu0 }
 0x11d   : > { %v413_v25 = vmul.f32 %v565_v22, %v405_v23 }
 0x11f   : > { %v566_v26 = vclamps-f32 %v413_v25, 16.0 }
 0x121   : > { %416 = vst [vmem:[%s242_s14] sm:$0xff] %v566_v26 }
 0x122   : > { %712 = shalt.err (!%p709_p9)
}
 0x123   : > { %s713_s12 = scalar_lea.hbm %s431_s19, 128  ;;  %s717_s9 = scalar_lea.hbm %s1002_s4, 768 }
 0x124   : > { %p714_p10 = scmp.ne.s32.totalorder %s431_s19, %s713_s12  ;;  %p718_p13 = scmp.lt.s32.totalorder %s431_s19, %s1002_s4 }
 0x125   : > { %p719_p0 = scmp.lt.s32.totalorder %s717_s9, %s713_s12 }
 0x126   : > { %p715_p11 = pnand %p714_p10, %p873_p3 }
 0x127   : > { %p720_p1 = por %p719_p0, %p718_p13 }
 0x128   : > { %p716_p12 = pneg %p715_p11 }
 0x12a   : > { %p721_p2 = pnand %p720_p1, %p716_p12 }
 0x12c   : > { %724 = shalt.err (!%p721_p2)
}
 0x12d   : > { %624 = dma.vmem_to_hbm [thread:$0]  (%p873_p3), %s434_s30, 128, %s431_s19, %s418_s23  }
 0x12e PF: > { %p630_p4 = scmp.ge.s32.totalorder %s791_s22, 2  ;;  %s445_s5 = sand.u32 1, %s763_s15  }
 0x12f   : > { %s446_s6 = scalar_lea.sflag [#allocation3], %s445_s5 }
 0x130   : > { %p627_p5 = pnand %p630_p4, %p882_p8 }
 0x132   : > { %p628_p6 = pneg %p627_p5 }
 0x134   : > { %758 = dma.done.wait (%p628_p6), %s446_s6, 128  }
 0x135   : > { %760 = vsyncadd (%p628_p6), %s446_s6, 4294967168  ;;  %s17_s22 = sadd.s32 1, %s791_s22   ;;  %s1005_s15 = smov %s767_s16 }
 0x136   : > { %p14_p7 = scmp.ge.s32.totalorder %s17_s22, 8   ;;  %s1006_s16 = smov %s771_s17 }
 0x137   : > { %s1007_s17 = smov %s891_s7  ;;  %s1008_s18 = smov %s783_s20 }
 0x138   : > { %s1009_s19 = smov %s787_s21  ;;  %s1010_s20 = smov %s1013_s25 }
 0x139   : > { %s1011_s21 = smov %s1017_s26  ;;  %16 = sbr.rel (!%p14_p7) target bundleno = 5 (0x5), region = 80 }
 0x13e   :  { %451 = vsyncpa [#allocation3], 1 }
 0x13f   :  { %453 = vsyncpa [#allocation3 + $0x1], 1 }

</bundles_post_ra>
